<compile_context>
chip_gen: v6e
topology: v6e:2x2x1
jax: 0.10.0
libtpu: 0.0.40
codegen_flags: <defaults>
</compile_context>

<pallas_src>
import jax
import jax.numpy as jnp
from jax.experimental import pallas as pl
from jax.experimental.pallas import tpu as pltpu


def _make_kernel(tm, tn, n_valid):
    """tm/tn: row/col tile sizes.  n_valid: rows/cols the loss is defined on."""
    n_chunks = tm // 8

    def kernel(bi_ref, bj_ref, first_ref, mask_ref,        # scalar prefetch (SMEM)
               a1_ref, a2t_ref, wd_ref, adj_ref, bd_ref,   # tiled / SMEM inputs
               out_ref):                                    # (8, 128) row-tile acc
        b = pl.program_id(0)
        bi = bi_ref[b]
        bj = bj_ref[b]
        need_mask = mask_ref[b] != 0

        # Zero this row tile's accumulator at the start of its residency.
        @pl.when(first_ref[b] != 0)
        def _init():
            out_ref[...] = jnp.zeros_like(out_ref)

        # Block-invariant loads hoisted out of the chunk loop (JAX does not CSE
        # broadcast_in_dim; wd arrives pre-broadcast to (H, tn) from the wrapper).
        a2 = a2t_ref[...]                 # (H, tn)  compute dtype
        wd = wd_ref[...]                  # (H, tn)  compute dtype
        bd = bd_ref[0]                    # scalar   f32
        row0 = bi * tm
        col = bj * tn + jax.lax.broadcasted_iota(jnp.int32, (8, tn), 1)

        def chunk(r, carry):
            r8 = pl.multiple_of(r * 8, 8)
            a1c = a1_ref[pl.ds(r8, 8), :]                        # (8, H)
            # (8, H, tn) slab for 8 rows only — never the full (tm, H, tn)
            # tensor (that would blow the 64-vreg file and force spills).
            slab = jnp.maximum(a1c[:, :, None] + a2[None, :, :], 0)
            d = jnp.sum((slab * wd[None, :, :]).astype(jnp.float32),
                        axis=1) + bd                             # (8, tn) f32
            # 2-class CE folded to binary CE with a stable softplus.
            adj_c = adj_ref[pl.ds(r8, 8), :]
            z = jnp.where(adj_c != 0, -d, d)                     # (1 - 2*adj) * d
            ce = jnp.maximum(z, 0.0) + jnp.log(1.0 + jnp.exp(-jnp.abs(z)))

            @pl.when(need_mask)
            def _edge():          # diagonal / cropped / padded blocks only
                row = row0 + r8 + jax.lax.broadcasted_iota(jnp.int32, (8, tn), 0)
                keep = (row < col) & (col < n_valid)
                out_ref[...] += jnp.where(keep, ce, 0.0)

            @pl.when(jnp.logical_not(need_mask))
            def _interior():      # fully interior block: no mask work at all
                out_ref[...] += ce

            return carry

        jax.lax.fori_loop(0, n_chunks, chunk, 0, unroll=2)

    return kernel


def adjmat_pred_loss(x1, x2, adj, w1a, w1b, b1, w2t, b2, *, coef_loss,
                     flag_defineloss_onlyon_pygneighinternal=False,
                     batch_size=None, compute_dtype=jnp.float32):
    """Forward pass of AdjMatPredLoss.

    x1:(N,D1)  x2:(N,D2)  adj:(N,N) — entries must be exactly 0/1 (any dtype;
        bf16 / int8 are fine and shrink the only O(N^2) HBM stream).
    w1a:(D1,H) w1b:(D2,H) b1:(H,)   — Linear(D1+D2 -> H), weight pre-split + T.
    w2t:(2,H)  b2:(2,)              — Linear(H -> 2).
    compute_dtype: jnp.bfloat16 is recommended on v6e/v7x when tolerance allows
        (d / CE accumulate in f32 regardless); keep f32 on v5e.
    """
    n, _ = x1.shape
    n2_, d2_ = x2.shape
    assert n == n2_ and adj.shape == (n, n)
    h = w1a.shape[1]
    assert w1b.shape == (d2_, h) and w2t.shape == (2, h) and b2.shape == (2,)

    if flag_defineloss_onlyon_pygneighinternal:
        assert batch_size is not None
        n_valid = int(batch_size)
    else:
        n_valid = n
    assert n_valid >= 2

    tm = 128 if n >= 128 else ((n + 7) // 8) * 8     # row tile (sublanes)
    tn = 128                                         # col tile (lanes)
    n_rows_pad = -(-n // tm) * tm
    n_cols_pad = -(-n // tn) * tn

    # ---- Layer 1 hoisted (plain XLA matmuls, O(N*D*H) exactly once) ---------
    f32 = jnp.float32
    a1 = jnp.dot(x1.astype(f32), w1a.astype(f32))                        # (N, H)
    a2t = (jnp.dot(x2.astype(f32), w1b.astype(f32))
           + b1.astype(f32)[None, :]).T                                  # (H, N)
    wdiff = (w2t[1] - w2t[0]).astype(f32)                                # (H,)
    bdiff = jnp.reshape(b2[1] - b2[0], (1,)).astype(f32)                 # SMEM

    cd = compute_dtype
    a1p = jnp.pad(a1, ((0, n_rows_pad - n), (0, 0))).astype(cd)
    a2tp = jnp.pad(a2t, ((0, 0), (0, n_cols_pad - n))).astype(cd)
    wdb = jnp.broadcast_to(wdiff.astype(cd)[:, None], (h, tn))           # (H, 128)
    adjp = jnp.pad(adj, ((0, n_rows_pad - n), (0, n_cols_pad - n)))      # caller dtype

    # ---- Packed upper-triangle block schedule (host side, static) -----------
    nrt = n_rows_pad // tm
    nct = n_cols_pad // tn
    blocks = []
    for i in range(nrt):
        for j in range(nct):
            c_max = min((j + 1) * tn, n_valid) - 1
            if n_valid > j * tn and i * tm < c_max:
                interior = ((i + 1) * tm - 1 < j * tn) and ((j + 1) * tn <= n_valid)
                blocks.append((i, j, 0 if interior else 1))
    assert blocks, "n_valid must be >= 2"
    bi_arr = jnp.asarray([blk[0] for blk in blocks], jnp.int32)
    bj_arr = jnp.asarray([blk[1] for blk in blocks], jnp.int32)
    mask_arr = jnp.asarray([blk[2] for blk in blocks], jnp.int32)
    first_arr = jnp.asarray(
        [1 if (k == 0 or blocks[k - 1][0] != blocks[k][0]) else 0
         for k in range(len(blocks))], jnp.int32)
    num_rt_used = blocks[-1][0] + 1          # included row tiles form a prefix

    kernel = _make_kernel(tm, tn, n_valid)

    partials = pl.pallas_call(
        kernel,
        out_shape=jax.ShapeDtypeStruct((num_rt_used * 8, 128), jnp.float32),
        grid_spec=pltpu.PrefetchScalarGridSpec(
            num_scalar_prefetch=4,
            grid=(len(blocks),),
            in_specs=[
                pl.BlockSpec((tm, h), lambda b, bi, bj, f, m: (bi[b], 0)),   # a1 rows
                pl.BlockSpec((h, tn), lambda b, bi, bj, f, m: (0, bj[b])),   # a2t cols
                pl.BlockSpec((h, tn), lambda b, bi, bj, f, m: (0, 0)),       # wdiff bcast
                pl.BlockSpec((tm, tn), lambda b, bi, bj, f, m: (bi[b], bj[b])),  # adjacency
                pl.BlockSpec(memory_space=pltpu.MemorySpace.SMEM),           # b2[1]-b2[0]
            ],
            out_specs=pl.BlockSpec((8, 128), lambda b, bi, bj, f, m: (bi[b], 0)),
        ),
        compiler_params=pltpu.CompilerParams(
            dimension_semantics=("arbitrary",)),
    )(bi_arr, bj_arr, first_arr, mask_arr, a1p, a2tp, wdb, adjp, bdiff)

    num = float(n_valid)
    inv_norm = 1.0 / (0.5 * num * (num - 1.0))
    return jnp.sum(partials) * (inv_norm * float(coef_loss))


def ref_loss(x1, x2, adj, w1a, w1b, b1, w2t, b2, coef_loss, flag_internal, bs):
    """Pure-JAX reference mirroring the PyTorch module exactly."""
    n = x1.shape[0]
    x1r = jnp.repeat(x1, n, axis=0)          # torch.repeat_interleave
    x2t = jnp.tile(x2, (n, 1))               # torch.tile
    pairs = jnp.concatenate([x1r, x2t], axis=1)
    w1 = jnp.concatenate([w1a, w1b], axis=0)
    hdn = jnp.maximum(pairs @ w1 + b1, 0.0)
    logits = hdn @ w2t.T + b2                # (N*N, 2)
    tgt = adj.reshape(-1).astype(jnp.int32)
    lse = jax.scipy.special.logsumexp(logits, axis=1)
    picked = jnp.take_along_axis(logits, tgt[:, None], axis=1)[:, 0]
    loss = (lse - picked).reshape(n, n)
    if flag_internal:
        loss = loss[:bs, :bs]
        num = float(bs)
    else:
        num = float(n)
    loss = jnp.triu(loss, k=1)
    return jnp.sum(loss) / (0.5 * num * (num - 1.0)) * coef_loss


if __name__ == "__main__":
    D1, D2, H = 16, 16, 32
    COEF = 1.5

    key = jax.random.PRNGKey(0)
    k_w1, k_b1, k_w2, k_b2, k_data = jax.random.split(key, 5)

    # Predictor params: Linear(D1+D2 -> H) -> ReLU -> Linear(H -> 2)
    w1 = 0.1 * jax.random.normal(k_w1, (D1 + D2, H), dtype=jnp.float32)
    w1a, w1b = w1[:D1], w1[D1:]
    b1 = 0.1 * jax.random.normal(k_b1, (H,), dtype=jnp.float32)
    w2t = 0.1 * jax.random.normal(k_w2, (2, H), dtype=jnp.float32)   # (out=2, H)
    b2 = 0.1 * jax.random.normal(k_b2, (2,), dtype=jnp.float32)

    def make_data(n, kk):
        k_x1, k_x2, k_adj = jax.random.split(kk, 3)
        x1 = jax.random.normal(k_x1, (n, D1), dtype=jnp.float32)
        x2 = jax.random.normal(k_x2, (n, D2), dtype=jnp.float32)
        # Synthetic symmetric 0/1 adjacency with zero diagonal (stands in for
        # pyg.utils.to_dense_adj + symmetrize + remove self-loops).
        a_raw = (jax.random.uniform(k_adj, (n, n)) < 0.3).astype(jnp.float32)
        adj = ((a_raw + a_raw.T) > 0.0).astype(jnp.float32)
        adj = adj * (1.0 - jnp.eye(n, dtype=jnp.float32))
        return x1, x2, adj

    k_small, k_mid, k_big = jax.random.split(k_data, 3)
    x1s, x2s, adjs = make_data(16, k_small)
    x1m, x2m, adjm = make_data(200, k_mid)     # exercises row/col padding + crop mask
    x1b, x2b, adjb = make_data(256, k_big)

    cases = [
        # (x1, x2, adj, flag_internal, batch_size, compute_dtype, rtol, atol)
        (x1s, x2s, adjs, False, None, jnp.float32, 1e-4, 1e-5),   # single-block path
        (x1s, x2s, adjs, True, 10, jnp.float32, 1e-4, 1e-5),      # internal crop
        (x1m, x2m, adjm, False, None, jnp.float32, 1e-4, 1e-5),   # padded tail blocks
        (x1b, x2b, adjb.astype(jnp.bfloat16), False, None, jnp.float32, 1e-4, 1e-5),
        (x1b, x2b, adjb.astype(jnp.bfloat16), True, 200, jnp.float32, 1e-4, 1e-5),
        # bf16 inner math (v6e/v7x path); d/CE still accumulate in f32.
        (x1b, x2b, adjb.astype(jnp.bfloat16), False, None, jnp.bfloat16, 2e-2, 1e-3),
    ]

    for (cx1, cx2, cadj, flag, bs, cdt, rtol, atol) in cases:
        out = adjmat_pred_loss(
            cx1, cx2, cadj, w1a, w1b, b1, w2t, b2, coef_loss=COEF,
            flag_defineloss_onlyon_pygneighinternal=flag, batch_size=bs,
            compute_dtype=cdt)
        out = jax.block_until_ready(out)
        ref = ref_loss(cx1, cx2, cadj.astype(jnp.float32), w1a, w1b, b1, w2t,
                       b2, COEF, flag, bs if flag else cx1.shape[0])
        assert jnp.allclose(out, ref, rtol=rtol, atol=atol), (flag, bs, cdt, out, ref)

    print("KERNEL_OK")
</pallas_src>

<mosaic_0001>
module attributes {stable_mosaic.version = 11 : i64} {
  func.func @kernel(%arg0: i32, %arg1: memref<1xi32, #tpu.memory_space<smem>>, %arg2: memref<1xi32, #tpu.memory_space<smem>>, %arg3: memref<1xi32, #tpu.memory_space<smem>>, %arg4: memref<1xi32, #tpu.memory_space<smem>>, %arg5: memref<16x32xf32, #tpu.memory_space<vmem>>, %arg6: memref<32x128xf32, #tpu.memory_space<vmem>>, %arg7: memref<32x128xf32, #tpu.memory_space<vmem>>, %arg8: memref<16x128xf32, #tpu.memory_space<vmem>>, %arg9: memref<1xf32, #tpu.memory_space<smem>>, %arg10: memref<8x128xf32, #tpu.memory_space<vmem>>) attributes {dimension_semantics = [#tpu.dimension_semantics<arbitrary>], iteration_bounds = array<i64: 1>, scalar_prefetch = 4 : i64, scratch_operands = 0 : i64, tpu.core_type = #tpu.core_type<tc>, window_params = [{transform_indices = @transform_0, window_bounds = array<i64: 16, 32>}, {transform_indices = @transform_1, window_bounds = array<i64: 32, 128>}, {pipeline_mode = #tpu.pipeline_mode<synchronous>, transform_indices = @transform_2, window_bounds = array<i64: 32, 128>}, {transform_indices = @transform_3, window_bounds = array<i64: 16, 128>}, {transform_indices = @transform_4, window_bounds = array<i64: 1>}, {transform_indices = @transform_5, window_bounds = array<i64: 8, 128>}]} {
    %0 = arith.index_cast %arg0 : i32 to index
    %1 = memref.load %arg1[%0] : memref<1xi32, #tpu.memory_space<smem>>
    %2 = arith.index_cast %arg0 : i32 to index
    %3 = memref.load %arg2[%2] : memref<1xi32, #tpu.memory_space<smem>>
    %4 = arith.index_cast %arg0 : i32 to index
    %5 = memref.load %arg4[%4] : memref<1xi32, #tpu.memory_space<smem>>
    %c0_i32 = arith.constant 0 : i32
    %6 = arith.cmpi ne, %5, %c0_i32 : i32
    %7 = arith.index_cast %arg0 : i32 to index
    %8 = memref.load %arg3[%7] : memref<1xi32, #tpu.memory_space<smem>>
    %c0_i32_0 = arith.constant 0 : i32
    %9 = arith.cmpi ne, %8, %c0_i32_0 : i32
    %10 = arith.extui %9 : i1 to i32
    %c0_i32_1 = arith.constant 0 : i32
    %11 = arith.cmpi ne, %10, %c0_i32_1 : i32
    scf.if %11 {
      %cst_30 = arith.constant 0.000000e+00 : f32
      %98 = vector.broadcast %cst_30 : f32 to vector<8x128xf32>
      %c0_31 = arith.constant 0 : index
      %c0_32 = arith.constant 0 : index
      %99 = vector.load %arg10[%c0_31, %c0_32] : memref<8x128xf32, #tpu.memory_space<vmem>>, vector<8x128xf32>
      tpu.vector_store %arg10[%c0_31, %c0_32], %98 {strides = array<i32>} : memref<8x128xf32, #tpu.memory_space<vmem>>, vector<8x128xf32>,
    } else {
    }
    %c0 = arith.constant 0 : index
    %c0_2 = arith.constant 0 : index
    %12 = vector.load %arg6[%c0, %c0_2] : memref<32x128xf32, #tpu.memory_space<vmem>>, vector<32x128xf32>
    %c0_3 = arith.constant 0 : index
    %c0_4 = arith.constant 0 : index
    %13 = vector.load %arg7[%c0_3, %c0_4] : memref<32x128xf32, #tpu.memory_space<vmem>>, vector<32x128xf32>
    %c0_5 = arith.constant 0 : index
    %14 = memref.load %arg9[%c0_5] : memref<1xf32, #tpu.memory_space<smem>>
    %c16_i32 = arith.constant 16 : i32
    %15 = arith.muli %1, %c16_i32 : i32
    %c128_i32 = arith.constant 128 : i32
    %16 = arith.muli %3, %c128_i32 : i32
    %17 = tpu.iota {dimensions = array<i32: 1>} : vector<8x128xi32>
    %18 = vector.broadcast %16 : i32 to vector<8x128xi32>
    %19 = arith.addi %18, %17 : vector<8x128xi32>
    %c0_i32_6 = arith.constant 0 : i32
    %c8_i32 = arith.constant 8 : i32
    %20 = arith.muli %c0_i32_6, %c8_i32 : i32
    %21 = tpu.assume_multiple %20, 8 : i32
    %22 = arith.index_cast %21 : i32 to index
    %c0_7 = arith.constant 0 : index
    %23 = vector.load %arg5[%22, %c0_7] : memref<16x32xf32, #tpu.memory_space<vmem>>, vector<8x32xf32>
    %24 = vector.shape_cast %23 : vector<8x32xf32> to vector<8x32x1xf32>
    %25 = vector.shape_cast %12 : vector<32x128xf32> to vector<1x32x128xf32>
    %26 = vector.broadcast %24 : vector<8x32x1xf32> to vector<8x32x128xf32>
    %27 = vector.broadcast %25 : vector<1x32x128xf32> to vector<8x32x128xf32>
    %28 = arith.addf %26, %27 : vector<8x32x128xf32>
    %cst = arith.constant 0.000000e+00 : f32
    %29 = vector.broadcast %cst : f32 to vector<8x32x128xf32>
    %30 = arith.maximumf %28, %29 : vector<8x32x128xf32>
    %31 = vector.shape_cast %13 : vector<32x128xf32> to vector<1x32x128xf32>
    %32 = vector.broadcast %31 : vector<1x32x128xf32> to vector<8x32x128xf32>
    %33 = arith.mulf %30, %32 : vector<8x32x128xf32>
    %cst_8 = arith.constant dense<0.000000e+00> : vector<8x128xf32>
    %34 = vector.multi_reduction <add>, %33, %cst_8 [1] : vector<8x32x128xf32> to vector<8x128xf32>
    %35 = vector.broadcast %14 : f32 to vector<8x128xf32>
    %36 = arith.addf %34, %35 : vector<8x128xf32>
    %37 = arith.index_cast %21 : i32 to index
    %c0_9 = arith.constant 0 : index
    %38 = vector.load %arg8[%37, %c0_9] : memref<16x128xf32, #tpu.memory_space<vmem>>, vector<8x128xf32>
    %cst_10 = arith.constant 0.000000e+00 : f32
    %39 = vector.broadcast %cst_10 : f32 to vector<8x128xf32>
    %40 = arith.cmpf one, %38, %39 : vector<8x128xf32>
    %cst_11 = arith.constant 0.000000e+00 : f32
    %41 = vector.broadcast %cst_11 : f32 to vector<8x128xf32>
    %42 = arith.subf %41, %36 : vector<8x128xf32>
    %43 = arith.select %40, %42, %36 : vector<8x128xi1>, vector<8x128xf32>
    %cst_12 = arith.constant 0.000000e+00 : f32
    %44 = vector.broadcast %cst_12 : f32 to vector<8x128xf32>
    %45 = arith.maximumf %43, %44 : vector<8x128xf32>
    %46 = math.absf %43 : vector<8x128xf32>
    %cst_13 = arith.constant 0.000000e+00 : f32
    %47 = vector.broadcast %cst_13 : f32 to vector<8x128xf32>
    %48 = arith.subf %47, %46 : vector<8x128xf32>
    %49 = math.exp %48 : vector<8x128xf32>
    %cst_14 = arith.constant 1.000000e+00 : f32
    %50 = vector.broadcast %cst_14 : f32 to vector<8x128xf32>
    %51 = arith.addf %50, %49 : vector<8x128xf32>
    %52 = math.log %51 : vector<8x128xf32>
    %53 = arith.addf %45, %52 : vector<8x128xf32>
    %54 = arith.extui %6 : i1 to i32
    %c0_i32_15 = arith.constant 0 : i32
    %55 = arith.cmpi ne, %54, %c0_i32_15 : i32
    scf.if %55 {
      %98 = arith.addi %15, %21 : i32
      %99 = tpu.iota {dimensions = array<i32: 0>} : vector<8x128xi32>
      %100 = vector.broadcast %98 : i32 to vector<8x128xi32>
      %101 = arith.addi %100, %99 : vector<8x128xi32>
      %102 = arith.cmpi slt, %101, %19 : vector<8x128xi32>
      %c16_i32_30 = arith.constant 16 : i32
      %103 = vector.broadcast %c16_i32_30 : i32 to vector<8x128xi32>
      %104 = arith.cmpi slt, %19, %103 : vector<8x128xi32>
      %105 = arith.andi %102, %104 : vector<8x128xi1>
      %c0_31 = arith.constant 0 : index
      %c0_32 = arith.constant 0 : index
      %106 = vector.load %arg10[%c0_31, %c0_32] : memref<8x128xf32, #tpu.memory_space<vmem>>, vector<8x128xf32>
      %cst_33 = arith.constant 0.000000e+00 : f32
      %107 = vector.broadcast %cst_33 : f32 to vector<8x128xf32>
      %108 = arith.select %105, %53, %107 : vector<8x128xi1>, vector<8x128xf32>
      %109 = arith.addf %106, %108 : vector<8x128xf32>
      %c0_34 = arith.constant 0 : index
      %c0_35 = arith.constant 0 : index
      %110 = vector.load %arg10[%c0_34, %c0_35] : memref<8x128xf32, #tpu.memory_space<vmem>>, vector<8x128xf32>
      tpu.vector_store %arg10[%c0_34, %c0_35], %109 {strides = array<i32>} : memref<8x128xf32, #tpu.memory_space<vmem>>, vector<8x128xf32>,
    } else {
    }
    %true = arith.constant true
    %56 = arith.xori %6, %true : i1
    %57 = arith.extui %56 : i1 to i32
    %c0_i32_16 = arith.constant 0 : i32
    %58 = arith.cmpi ne, %57, %c0_i32_16 : i32
    scf.if %58 {
      %c0_30 = arith.constant 0 : index
      %c0_31 = arith.constant 0 : index
      %98 = vector.load %arg10[%c0_30, %c0_31] : memref<8x128xf32, #tpu.memory_space<vmem>>, vector<8x128xf32>
      %99 = arith.addf %98, %53 : vector<8x128xf32>
      %c0_32 = arith.constant 0 : index
      %c0_33 = arith.constant 0 : index
      %100 = vector.load %arg10[%c0_32, %c0_33] : memref<8x128xf32, #tpu.memory_space<vmem>>, vector<8x128xf32>
      tpu.vector_store %arg10[%c0_32, %c0_33], %99 {strides = array<i32>} : memref<8x128xf32, #tpu.memory_space<vmem>>, vector<8x128xf32>,
    } else {
    }
    %c1_i32 = arith.constant 1 : i32
    %c8_i32_17 = arith.constant 8 : i32
    %59 = arith.muli %c1_i32, %c8_i32_17 : i32
    %60 = tpu.assume_multiple %59, 8 : i32
    %61 = arith.index_cast %60 : i32 to index
    %c0_18 = arith.constant 0 : index
    %62 = vector.load %arg5[%61, %c0_18] : memref<16x32xf32, #tpu.memory_space<vmem>>, vector<8x32xf32>
    %63 = vector.shape_cast %62 : vector<8x32xf32> to vector<8x32x1xf32>
    %64 = vector.shape_cast %12 : vector<32x128xf32> to vector<1x32x128xf32>
    %65 = vector.broadcast %63 : vector<8x32x1xf32> to vector<8x32x128xf32>
    %66 = vector.broadcast %64 : vector<1x32x128xf32> to vector<8x32x128xf32>
    %67 = arith.addf %65, %66 : vector<8x32x128xf32>
    %cst_19 = arith.constant 0.000000e+00 : f32
    %68 = vector.broadcast %cst_19 : f32 to vector<8x32x128xf32>
    %69 = arith.maximumf %67, %68 : vector<8x32x128xf32>
    %70 = vector.shape_cast %13 : vector<32x128xf32> to vector<1x32x128xf32>
    %71 = vector.broadcast %70 : vector<1x32x128xf32> to vector<8x32x128xf32>
    %72 = arith.mulf %69, %71 : vector<8x32x128xf32>
    %cst_20 = arith.constant dense<0.000000e+00> : vector<8x128xf32>
    %73 = vector.multi_reduction <add>, %72, %cst_20 [1] : vector<8x32x128xf32> to vector<8x128xf32>
    %74 = vector.broadcast %14 : f32 to vector<8x128xf32>
    %75 = arith.addf %73, %74 : vector<8x128xf32>
    %76 = arith.index_cast %60 : i32 to index
    %c0_21 = arith.constant 0 : index
    %77 = vector.load %arg8[%76, %c0_21] : memref<16x128xf32, #tpu.memory_space<vmem>>, vector<8x128xf32>
    %cst_22 = arith.constant 0.000000e+00 : f32
    %78 = vector.broadcast %cst_22 : f32 to vector<8x128xf32>
    %79 = arith.cmpf one, %77, %78 : vector<8x128xf32>
    %cst_23 = arith.constant 0.000000e+00 : f32
    %80 = vector.broadcast %cst_23 : f32 to vector<8x128xf32>
    %81 = arith.subf %80, %75 : vector<8x128xf32>
    %82 = arith.select %79, %81, %75 : vector<8x128xi1>, vector<8x128xf32>
    %cst_24 = arith.constant 0.000000e+00 : f32
    %83 = vector.broadcast %cst_24 : f32 to vector<8x128xf32>
    %84 = arith.maximumf %82, %83 : vector<8x128xf32>
    %85 = math.absf %82 : vector<8x128xf32>
    %cst_25 = arith.constant 0.000000e+00 : f32
    %86 = vector.broadcast %cst_25 : f32 to vector<8x128xf32>
    %87 = arith.subf %86, %85 : vector<8x128xf32>
    %88 = math.exp %87 : vector<8x128xf32>
    %cst_26 = arith.constant 1.000000e+00 : f32
    %89 = vector.broadcast %cst_26 : f32 to vector<8x128xf32>
    %90 = arith.addf %89, %88 : vector<8x128xf32>
    %91 = math.log %90 : vector<8x128xf32>
    %92 = arith.addf %84, %91 : vector<8x128xf32>
    %93 = arith.extui %6 : i1 to i32
    %c0_i32_27 = arith.constant 0 : i32
    %94 = arith.cmpi ne, %93, %c0_i32_27 : i32
    scf.if %94 {
      %98 = arith.addi %15, %60 : i32
      %99 = tpu.iota {dimensions = array<i32: 0>} : vector<8x128xi32>
      %100 = vector.broadcast %98 : i32 to vector<8x128xi32>
      %101 = arith.addi %100, %99 : vector<8x128xi32>
      %102 = arith.cmpi slt, %101, %19 : vector<8x128xi32>
      %c16_i32_30 = arith.constant 16 : i32
      %103 = vector.broadcast %c16_i32_30 : i32 to vector<8x128xi32>
      %104 = arith.cmpi slt, %19, %103 : vector<8x128xi32>
      %105 = arith.andi %102, %104 : vector<8x128xi1>
      %c0_31 = arith.constant 0 : index
      %c0_32 = arith.constant 0 : index
      %106 = vector.load %arg10[%c0_31, %c0_32] : memref<8x128xf32, #tpu.memory_space<vmem>>, vector<8x128xf32>
      %cst_33 = arith.constant 0.000000e+00 : f32
      %107 = vector.broadcast %cst_33 : f32 to vector<8x128xf32>
      %108 = arith.select %105, %92, %107 : vector<8x128xi1>, vector<8x128xf32>
      %109 = arith.addf %106, %108 : vector<8x128xf32>
      %c0_34 = arith.constant 0 : index
      %c0_35 = arith.constant 0 : index
      %110 = vector.load %arg10[%c0_34, %c0_35] : memref<8x128xf32, #tpu.memory_space<vmem>>, vector<8x128xf32>
      tpu.vector_store %arg10[%c0_34, %c0_35], %109 {strides = array<i32>} : memref<8x128xf32, #tpu.memory_space<vmem>>, vector<8x128xf32>,
    } else {
    }
    %true_28 = arith.constant true
    %95 = arith.xori %6, %true_28 : i1
    %96 = arith.extui %95 : i1 to i32
    %c0_i32_29 = arith.constant 0 : i32
    %97 = arith.cmpi ne, %96, %c0_i32_29 : i32
    scf.if %97 {
      %c0_30 = arith.constant 0 : index
      %c0_31 = arith.constant 0 : index
      %98 = vector.load %arg10[%c0_30, %c0_31] : memref<8x128xf32, #tpu.memory_space<vmem>>, vector<8x128xf32>
      %99 = arith.addf %98, %92 : vector<8x128xf32>
      %c0_32 = arith.constant 0 : index
      %c0_33 = arith.constant 0 : index
      %100 = vector.load %arg10[%c0_32, %c0_33] : memref<8x128xf32, #tpu.memory_space<vmem>>, vector<8x128xf32>
      tpu.vector_store %arg10[%c0_32, %c0_33], %99 {strides = array<i32>} : memref<8x128xf32, #tpu.memory_space<vmem>>, vector<8x128xf32>,
    } else {
    }
    %c2_i32 = arith.constant 2 : i32
    return
  }
  func.func @transform_0(%arg0: i32, %arg1: memref<1xi32, #tpu.memory_space<smem>>, %arg2: memref<1xi32, #tpu.memory_space<smem>>, %arg3: memref<1xi32, #tpu.memory_space<smem>>, %arg4: memref<1xi32, #tpu.memory_space<smem>>) -> (i32, i32) {
    %0 = arith.index_cast %arg0 : i32 to index
    %1 = memref.load %arg1[%0] : memref<1xi32, #tpu.memory_space<smem>>
    %c0_i32 = arith.constant 0 : i32
    %c0_i32_0 = arith.constant 0 : i32
    return %1, %c0_i32 : i32, i32
  }
  func.func @transform_1(%arg0: i32, %arg1: memref<1xi32, #tpu.memory_space<smem>>, %arg2: memref<1xi32, #tpu.memory_space<smem>>, %arg3: memref<1xi32, #tpu.memory_space<smem>>, %arg4: memref<1xi32, #tpu.memory_space<smem>>) -> (i32, i32) {
    %0 = arith.index_cast %arg0 : i32 to index
    %1 = memref.load %arg2[%0] : memref<1xi32, #tpu.memory_space<smem>>
    %c0_i32 = arith.constant 0 : i32
    %c0_i32_0 = arith.constant 0 : i32
    return %c0_i32, %1 : i32, i32
  }
  func.func @transform_2(%arg0: i32, %arg1: memref<1xi32, #tpu.memory_space<smem>>, %arg2: memref<1xi32, #tpu.memory_space<smem>>, %arg3: memref<1xi32, #tpu.memory_space<smem>>, %arg4: memref<1xi32, #tpu.memory_space<smem>>) -> (i32, i32) {
    %c0_i32 = arith.constant 0 : i32
    %c0_i32_0 = arith.constant 0 : i32
    %c0_i32_1 = arith.constant 0 : i32
    return %c0_i32, %c0_i32_0 : i32, i32
  }
  func.func @transform_3(%arg0: i32, %arg1: memref<1xi32, #tpu.memory_space<smem>>, %arg2: memref<1xi32, #tpu.memory_space<smem>>, %arg3: memref<1xi32, #tpu.memory_space<smem>>, %arg4: memref<1xi32, #tpu.memory_space<smem>>) -> (i32, i32) {
    %0 = arith.index_cast %arg0 : i32 to index
    %1 = memref.load %arg1[%0] : memref<1xi32, #tpu.memory_space<smem>>
    %2 = arith.index_cast %arg0 : i32 to index
    %3 = memref.load %arg2[%2] : memref<1xi32, #tpu.memory_space<smem>>
    %c0_i32 = arith.constant 0 : i32
    return %1, %3 : i32, i32
  }
  func.func @transform_4(%arg0: i32, %arg1: memref<1xi32, #tpu.memory_space<smem>>, %arg2: memref<1xi32, #tpu.memory_space<smem>>, %arg3: memref<1xi32, #tpu.memory_space<smem>>, %arg4: memref<1xi32, #tpu.memory_space<smem>>) -> i32 {
    %c0_i32 = arith.constant 0 : i32
    %c0_i32_0 = arith.constant 0 : i32
    return %c0_i32 : i32
  }
  func.func @transform_5(%arg0: i32, %arg1: memref<1xi32, #tpu.memory_space<smem>>, %arg2: memref<1xi32, #tpu.memory_space<smem>>, %arg3: memref<1xi32, #tpu.memory_space<smem>>, %arg4: memref<1xi32, #tpu.memory_space<smem>>) -> (i32, i32) {
    %0 = arith.index_cast %arg0 : i32 to index
    %1 = memref.load %arg1[%0] : memref<1xi32, #tpu.memory_space<smem>>
    %c0_i32 = arith.constant 0 : i32
    %c0_i32_0 = arith.constant 0 : i32
    return %1, %c0_i32 : i32, i32
  }
}

</mosaic_0001>

<bundles_post_ra>
// kernel: tpu_custom_call.1
= control target key start
LH: loop header
LB: loop body
LE: loop exit
PB: predicated region body
PF: predicated region fallthrough
CT: control target
= control target key end

     0   :  { %s1540_s0 = inlined_call_operand.<no memory space> [shape: s32[1], index: 0, kind: input, shape index: {}]   ;;  %s1541_s1 = inlined_call_operand.<no memory space> [shape: s32[1], index: 1, kind: input, shape index: {}]   ;;  %s1542_s2 = inlined_call_operand.<no memory space> [shape: s32[1], index: 2, kind: input, shape index: {}]   ;;  %s1543_s3 = inlined_call_operand.<no memory space> [shape: s32[1], index: 3, kind: input, shape index: {}]   ;;  %s1544_s4 = inlined_call_operand.hbm [shape: f32[16,32], index: 4, kind: input, shape index: {}]   ;;  %s1545_s5 = inlined_call_operand.hbm [shape: f32[32,128], index: 5, kind: input, shape index: {}]   ;;  %s1546_s6 = inlined_call_operand.hbm [shape: f32[32,128], index: 6, kind: input, shape index: {}]   ;;  %s1547_s7 = inlined_call_operand.hbm [shape: f32[16,128], index: 7, kind: input, shape index: {}]   ;;  %s1548_s8 = inlined_call_operand.<no memory space> [shape: f32[1], index: 8, kind: input, shape index: {}]   ;;  %s1549_s9 = inlined_call_operand.hbm [shape: f32[8,128], index: 9, kind: output, shape index: {}]  }
   0x1   :  { %14 = sst [smem:[#allocation3]] %s1540_s0 }
   0x2   :  { %18 = sst [smem:[#allocation7]] %s1548_s8 }
   0x3   :  { %19 = vsyncpa [#allocation9], 0 }
   0x4   :  { %20 = vsyncpa [#allocation12], 0 }
   0x5   :  { %21 = vsyncpa [#allocation15], 0 }
   0x6   :  { %22 = vsyncpa [#allocation10], 0  ;;  %s977_s15 = sshll.u32 %s1541_s1, 7  ;;  %s1121_s20 = smov [#allocation11]  }
   0x7   :  { %s46_s0 = scalar_lea.hbm %s1545_s5, %s977_s15  ;;  %s47_s21 = sshll.u32 %s1121_s20, 4  ;;  %s48_s21 = int_to_ptr.vmem [resolvable:$true] %s47_s21 }
   0x8   :  { %s1195_s8 = sld [smem:[#allocation3]]  ;;  %s1005_s22 = scalar_lea.hbm %s46_s0, 512 }
   0x9   :  { %p1006_p0 = scmp.ne.s32.totalorder %s46_s0, %s1005_s22  ;;  %s1007_s25 = scalar_lea.hbm %s1545_s5, 512 }
   0xa   :  { %p1008_p1 = scmp.lt.s32.totalorder %s46_s0, %s1545_s5  ;;  %p1009_p2 = scmp.lt.s32.totalorder %s1007_s25, %s1005_s22 }
   0xc   :  { %p1010_p3 = por %p1009_p2, %p1008_p1 }
   0xe   :  { %p1011_p4 = pnand %p1010_p3, %p1006_p0 }
  0x10   :  { %1014 = shalt.err (!%p1011_p4)
}
  0x11   :  { %s1015_s28 = scalar_lea.vmem %s48_s21, 512  ;;  %p1020_p6 = scmp.lt.s32.totalorder %s48_s21, %s48_s21 }
  0x12   :  { %p1016_p5 = scmp.ne.s32.totalorder %s48_s21, %s1015_s28  ;;  %p1021_p7 = scmp.lt.s32.totalorder %s1015_s28, %s1015_s28 }
  0x14   :  { %p1022_p8 = por %p1021_p7, %p1020_p6 }
  0x16   :  { %p1023_p9 = pnand %p1022_p8, %p1016_p5 }
  0x18   :  { %1026 = shalt.err (!%p1023_p9)
}
  0x19   :  { %s1122_s29 = smov 128   ;;  %s1123_s30 = smov 8  }
  0x1a   :  { %53 = dma.hbm_to_vmem [thread:$0]  %s46_s0, 512, %s48_s21, [#allocation12], %s1122_s29, %s1122_s29, %s1123_s30  }
  0x1b   :  { %s1124_s10 = smov [#allocation8]   ;;  %s1125_s5 = smov [#allocation13]  }
  0x1c   :  { %s32_s11 = sshll.u32 %s1124_s10, 4  ;;  %s59_s12 = sshll.u32 %s1125_s5, 4  ;;  %s1206_s11 = int_to_ptr.vmem [resolvable:$true] %s32_s11  ;;  %s60_s12 = int_to_ptr.vmem [resolvable:$true] %s59_s12 }
  0x1d   :  { %s1035_s13 = scalar_lea.vmem %s60_s12, 512  ;;  %p1040_p11 = scmp.lt.s32.totalorder %s60_s12, %s60_s12 }
  0x1e   :  { %p1036_p10 = scmp.ne.s32.totalorder %s60_s12, %s1035_s13  ;;  %p1041_p12 = scmp.lt.s32.totalorder %s1035_s13, %s1035_s13 }
  0x20   :  { %p1042_p13 = por %p1041_p12, %p1040_p11 }
  0x22   :  { %p1043_p0 = pnand %p1042_p13, %p1036_p10 }
  0x24   :  { %1046 = shalt.err (!%p1043_p0)
}
  0x25   :  { %65 = dma.hbm_to_vmem [thread:$0]  %s1546_s6, 512, %s60_s12, [#allocation12], %s1122_s29, %s1122_s29, %s1123_s30  }
  0x26   :  { %s988_s17 = sshll.u32 %s1195_s8, 8  ;;  %s978_s18 = sshll.u32 %s1195_s8, 1 }
  0x27   :  { %s31_s20 = scalar_lea.hbm %s1544_s4, %s988_s17  ;;  %s74_s23 = sadd.s32 %s978_s18, %s1541_s1 }
  0x28   :  { %s1047_s24 = scalar_lea.hbm %s31_s20, 256  ;;  %s1049_s27 = scalar_lea.hbm %s1544_s4, 256 }
  0x29   :  { %p1048_p1 = scmp.ne.s32.totalorder %s31_s20, %s1047_s24  ;;  %p1050_p2 = scmp.lt.s32.totalorder %s31_s20, %s1544_s4 }
  0x2a   :  { %p1051_p3 = scmp.lt.s32.totalorder %s1049_s27, %s1047_s24 }
  0x2c   :  { %p1052_p4 = por %p1051_p3, %p1050_p2 }
  0x2e   :  { %p1053_p5 = pnand %p1052_p4, %p1048_p1 }
  0x30   :  { %1056 = shalt.err (!%p1053_p5)
}
  0x31   :  { %s1057_s6 = scalar_lea.vmem %s1206_s11, 256  ;;  %p1062_p7 = scmp.lt.s32.totalorder %s1206_s11, %s1206_s11 }
  0x32   :  { %p1058_p6 = scmp.ne.s32.totalorder %s1206_s11, %s1057_s6  ;;  %p1063_p8 = scmp.lt.s32.totalorder %s1057_s6, %s1057_s6 }
  0x34   :  { %p1064_p9 = por %p1063_p8, %p1062_p7 }
  0x36   :  { %p1065_p10 = pnand %p1064_p9, %p1058_p6 }
  0x38   :  { %1068 = shalt.err (!%p1065_p10)
}
  0x39   :  { %38 = dma.hbm_to_vmem [thread:$0]  %s31_s20, 256, %s1206_s11, [#allocation9], %s1122_s29, %s1122_s29, %s1123_s30  }
  0x3a   :  { %s979_s4 = sshll.u32 %s74_s23, 7  ;;  %s1126_s13 = smov [#allocation14]  }
  0x3b   :  { %s76_s12 = scalar_lea.hbm %s1547_s7, %s979_s4  ;;  %s77_s14 = sshll.u32 %s1126_s13, 4  ;;  %s78_s14 = int_to_ptr.vmem [resolvable:$true] %s77_s14 }
  0x3c   :  { %s1069_s16 = scalar_lea.hbm %s76_s12, 256  ;;  %s1071_s19 = scalar_lea.hbm %s1547_s7, 256 }
  0x3d   :  { %p1070_p11 = scmp.ne.s32.totalorder %s76_s12, %s1069_s16  ;;  %p1072_p12 = scmp.lt.s32.totalorder %s76_s12, %s1547_s7 }
  0x3e   :  { %p1073_p13 = scmp.lt.s32.totalorder %s1071_s19, %s1069_s16 }
  0x40   :  { %p1074_p0 = por %p1073_p13, %p1072_p12 }
  0x42   :  { %p1075_p1 = pnand %p1074_p0, %p1070_p11 }
  0x44   :  { %1078 = shalt.err (!%p1075_p1)
}
  0x45   :  { %s1079_s11 = scalar_lea.vmem %s78_s14, 256  ;;  %p1084_p3 = scmp.lt.s32.totalorder %s78_s14, %s78_s14 }
  0x46   :  { %p1080_p2 = scmp.ne.s32.totalorder %s78_s14, %s1079_s11  ;;  %p1085_p4 = scmp.lt.s32.totalorder %s1079_s11, %s1079_s11 }
  0x48   :  { %p1086_p5 = por %p1085_p4, %p1084_p3 }
  0x4a   :  { %p1087_p6 = pnand %p1086_p5, %p1080_p2 }
  0x4c   :  { %1090 = shalt.err (!%p1087_p6)
}
  0x4d   :  { %83 = dma.hbm_to_vmem [thread:$0]  %s76_s12, 256, %s78_s14, [#allocation15], %s1122_s29, %s1122_s29, %s1123_s30  }
  0x4e   :  { %1113 = dma.done.wait [#allocation9], 256  }
  0x4f   :  { %1114 = vsyncadd [#allocation9], 4294967040 }
  0x50   :  { %1115 = dma.done.wait [#allocation12], 1024  }
  0x51   :  { %1116 = vsyncadd [#allocation12], 4294966272 }
  0x52   :  { %1117 = dma.done.wait [#allocation15], 256  }
  0x53   :  { %1118 = vsyncadd [#allocation15], 4294967040  ;;  %s1248_s7 = sld [smem:[#allocation3]]  ;;  %p980_p7 = scmp.eq.s32.totalorder %s1542_s2, 0 }
  0x55   :  { %113 = sbr.rel (%p980_p7) target bundleno = 92 (0x5c), region = 41 }
  0x5a   :  { %v1127_v0 = vmov 0.0  }
  0x5b   :  { %114 = vst [vmem:[#allocation16] sm:$0xff] %v1127_v0 }
  0x5c PF:  { %v126_v1 = vlaneseq  ;;  %v128_v2 = vstv %s977_s15  ;;  %v130_v5 = vld [vmem:[#allocation8] sm:$0xff]  ;;  %s981_s1 = sshll.u32 %s1248_s7, 4  ;;  %v1286_v33 = vld [vmem:[#allocation11 + $0x8] sm:$0xff]  ;;  %v1290_v36 = vld [vmem:[#allocation11] sm:$0xff]  ;;  %s123_s2 = sld [smem:[#allocation7]]  ;;  %vm478_vm0 = vcmask 1041409  }
  0x5d   :  { %v1292_v37 = vld [vmem:[#allocation11 + $0x10] sm:$0xff]  ;;  %v1295_v40 = vld [vmem:[#allocation11 + $0x18] sm:$0xff]  ;;  %v1301_v47 = vld [vmem:[#allocation13 + $0x8] sm:$0xff]  ;;  %vm480_vm1 = vcmask 1042434   ;;  %vm482_vm2 = vcmask 1043459   ;;  %vm484_vm3 = vcmask 1044484  }
  0x5e   :  { %v1257_v3 = vshrl.u32 %v126_v1, 7  ;;  %v127_v4 = vand.u32 127, %v126_v1  ;;  %v1307_v56 = vld [vmem:[#allocation13] sm:$0xff]  ;;  %v1309_v57 = vld [vmem:[#allocation13 + $0x10] sm:$0xff]  ;;  %v1314_v1 = vld [vmem:[#allocation13 + $0x18] sm:$0xff]  ;;  %vm486_vm4 = vcmask 1045509  }
  0x5f   :  { %vm488_vm5 = vcmask 1046534   ;;  %vm490_vm6 = vcmask 1047559   ;;  %p983_p8 = scmp.eq.s32.totalorder %s1543_s3, 0 }
  0x60   :  { %v152_v6 = vsub.s32 1, %v1257_v3  ;;  %v1260_v7 = vadd.s32 %v128_v2, %v127_v4  ;;  %v133_v8 = vsub.s32 0, %v1257_v3  ;;  %v171_v11 = vsub.s32 2, %v1257_v3 }
  0x61   :  { %v190_v13 = vsub.s32 3, %v1257_v3  ;;  %v209_v15 = vsub.s32 4, %v1257_v3  ;;  %v228_v17 = vsub.s32 5, %v1257_v3  ;;  %v247_v19 = vsub.s32 6, %v1257_v3 }
  0x62   :  { %v153_v9 = vrot.slane %v130_v5, %v152_v6  ;;  %v134_v10 = vrot.slane %v130_v5, %v133_v8  ;;  %v172_v12 = vrot.slane %v130_v5, %v171_v11  ;;  %v266_v21 = vsub.s32 7, %v1257_v3 }
  0x63   :  { %v191_v14 = vrot.slane %v130_v5, %v190_v13  ;;  %v210_v16 = vrot.slane %v130_v5, %v209_v15  ;;  %v229_v18 = vrot.slane %v130_v5, %v228_v17  ;;  %v248_v20 = vrot.slane %v130_v5, %v247_v19 }
  0x64   :  { %155 = vbcast.lane.b32.xlu1 %v153_v9, 256  ;;  %136 = vbcast.lane.b32.xlu0 %v134_v10, 256  ;;  %v267_v22 = vrot.slane %v130_v5, %v266_v21 }
  0x68   :  { %159 = vbcast.lane.b32.xlu1 %v153_v9, 264  ;;  %140 = vbcast.lane.b32.xlu0 %v134_v10, 264 }
  0x6c   :  { %178 = vbcast.lane.b32.xlu1 %v172_v12, 264  ;;  %174 = vbcast.lane.b32.xlu0 %v172_v12, 256 }
  0x70   :  { %163 = vbcast.lane.b32.xlu1 %v153_v9, 272  ;;  %144 = vbcast.lane.b32.xlu0 %v134_v10, 272 }
  0x74   :  { %197 = vbcast.lane.b32.xlu1 %v191_v14, 264  ;;  %193 = vbcast.lane.b32.xlu0 %v191_v14, 256 }
  0x78   :  { %212 = vbcast.lane.b32.xlu1 %v210_v16, 256  ;;  %182 = vbcast.lane.b32.xlu0 %v172_v12, 272 }
  0x7c   :  { %148 = vbcast.lane.b32.xlu1 %v134_v10, 280  ;;  %216 = vbcast.lane.b32.xlu0 %v210_v16, 264 }
  0x80   :  { %201 = vbcast.lane.b32.xlu1 %v191_v14, 272  ;;  %167 = vbcast.lane.b32.xlu0 %v153_v9, 280 }
  0x84   :  { %235 = vbcast.lane.b32.xlu1 %v229_v18, 264  ;;  %231 = vbcast.lane.b32.xlu0 %v229_v18, 256 }
  0x88   :  { %220 = vbcast.lane.b32.xlu1 %v210_v16, 272  ;;  %186 = vbcast.lane.b32.xlu0 %v172_v12, 280 }
  0x8c   :  { %254 = vbcast.lane.b32.xlu1 %v248_v20, 264  ;;  %250 = vbcast.lane.b32.xlu0 %v248_v20, 256 }
  0x90   :  { %239 = vbcast.lane.b32.xlu1 %v229_v18, 272  ;;  %205 = vbcast.lane.b32.xlu0 %v191_v14, 280 }
  0x94   :  { %273 = vbcast.lane.b32.xlu1 %v267_v22, 264  ;;  %269 = vbcast.lane.b32.xlu0 %v267_v22, 256 }
  0x98   :  { %258 = vbcast.lane.b32.xlu1 %v248_v20, 272  ;;  %224 = vbcast.lane.b32.xlu0 %v210_v16, 280 }
  0x9c   :  { %277 = vbcast.lane.b32.xlu1 %v267_v22, 272  ;;  %243 = vbcast.lane.b32.xlu0 %v229_v18, 280 }
  0xa0   :  { %281 = vbcast.lane.b32.xlu1 %v267_v22, 280  ;;  %262 = vbcast.lane.b32.xlu0 %v248_v20, 280 }
  0xd6   :  { %v156_v23 = vpop.permute.xlu1 %155  ;;  %v137_v24 = vpop.permute.xlu0 %136 }
  0xd7   :  { %v283_v42 = vadd.f32 %v137_v24, %v1290_v36  ;;  %v287_v52 = vadd.f32 %v156_v23, %v1290_v36 }
  0xd9   :  { %v315_v53 = vmax.f32 %v283_v42, 0.0  ;;  %v319_v5 = vmax.f32 %v287_v52, 0.0 }
  0xda   :  { %v160_v25 = vpop.permute.xlu1 %159  ;;  %v141_v26 = vpop.permute.xlu0 %140 }
  0xdb   :  { %v284_v38 = vadd.f32 %v141_v26, %v1286_v33  ;;  %v288_v44 = vadd.f32 %v160_v25, %v1286_v33  ;;  %v347_v9 = vmul.f32 %v315_v53, %v1307_v56 }
  0xdd   :  { %v316_v45 = vmax.f32 %v284_v38, 0.0  ;;  %v320_v59 = vmax.f32 %v288_v44, 0.0 }
  0xde   :  { %v179_v27 = vpop.permute.xlu1 %178  ;;  %v175_v28 = vpop.permute.xlu0 %174 }
  0xdf   :  { %v292_v48 = vadd.f32 %v179_v27, %v1286_v33  ;;  %v291_v49 = vadd.f32 %v175_v28, %v1290_v36  ;;  %v348_v60 = vmul.f32 %v316_v45, %v1301_v47  ;;  %v352_v16 = vmul.f32 %v320_v59, %v1301_v47 }
  0xe1   :  { %v324_v63 = vmax.f32 %v292_v48, 0.0  ;;  %v323_v0 = vmax.f32 %v291_v49, 0.0  ;;  %v379_v18 = vadd.f32 %v348_v60, %v347_v9 }
  0xe2   :  { %v164_v29 = vpop.permute.xlu1 %163  ;;  %v145_v30 = vpop.permute.xlu0 %144 }
  0xe3   :  { %v285_v43 = vadd.f32 %v145_v30, %v1292_v37  ;;  %v289_v54 = vadd.f32 %v164_v29, %v1292_v37  ;;  %v356_v23 = vmul.f32 %v324_v63, %v1301_v47  ;;  %v355_v24 = vmul.f32 %v323_v0, %v1307_v56 }
  0xe4   :  { %v351_v29 = vmul.f32 %v319_v5, %v1307_v56 }
  0xe5   :  { %v317_v55 = vmax.f32 %v285_v43, 0.0  ;;  %v321_v10 = vmax.f32 %v289_v54, 0.0 }
  0xe6   :  { %v198_v31 = vpop.permute.xlu1 %197  ;;  %v194_v32 = vpop.permute.xlu0 %193  ;;  %v388_v43 = vadd.f32 %v352_v16, %v351_v29 }
  0xe7   :  { %v349_v12 = vmul.f32 %v317_v55, %v1309_v57  ;;  %v296_v25 = vadd.f32 %v198_v31, %v1286_v33  ;;  %v295_v26 = vadd.f32 %v194_v32, %v1290_v36  ;;  %v353_v30 = vmul.f32 %v321_v10, %v1309_v57 }
  0xe8   :  { %v397_v31 = vadd.f32 %v356_v23, %v355_v24 }
  0xe9   :  { %v327_v32 = vmax.f32 %v295_v26, 0.0  ;;  %v389_v52 = vadd.f32 %v388_v43, %v353_v30 }
  0xea   :  { %v1288_v34 = vpop.permute.xlu1 %212  ;;  %v183_v35 = vpop.permute.xlu0 %182 }
  0xeb   :  { %v293_v58 = vadd.f32 %v183_v35, %v1292_v37  ;;  %v380_v35 = vadd.f32 %v379_v18, %v349_v12  ;;  %v299_v53 = vadd.f32 %v1288_v34, %v1290_v36  ;;  %v359_v0 = vmul.f32 %v327_v32, %v1307_v56 }
  0xed   :  { %v325_v14 = vmax.f32 %v293_v58, 0.0  ;;  %v331_v10 = vmax.f32 %v299_v53, 0.0 }
  0xee   :  { %v149_v39 = vpop.permute.xlu1 %148  ;;  %v217_v41 = vpop.permute.xlu0 %216 }
  0xef   :  { %v286_v46 = vadd.f32 %v149_v39, %v1295_v40  ;;  %v357_v38 = vmul.f32 %v325_v14, %v1309_v57  ;;  %v300_v54 = vadd.f32 %v217_v41, %v1286_v33 }
  0xf1   :  { %v318_v61 = vmax.f32 %v286_v46, 0.0  ;;  %v328_v46 = vmax.f32 %v296_v25, 0.0  ;;  %v398_v55 = vadd.f32 %v397_v31, %v357_v38  ;;  %v332_v34 = vmax.f32 %v300_v54, 0.0 }
  0xf2   :  { %v202_v50 = vpop.permute.xlu1 %201  ;;  %v168_v51 = vpop.permute.xlu0 %167 }
  0xf3   :  { %v290_v62 = vadd.f32 %v168_v51, %v1295_v40  ;;  %v350_v20 = vmul.f32 %v318_v61, %v1314_v1  ;;  %v297_v39 = vadd.f32 %v202_v50, %v1292_v37  ;;  %v360_v63 = vmul.f32 %v328_v46, %v1301_v47 }
  0xf4   :  { %v364_v29 = vmul.f32 %v332_v34, %v1301_v47 }
  0xf5   :  { %v322_v22 = vmax.f32 %v290_v62, 0.0  ;;  %v381_v44 = vadd.f32 %v380_v35, %v350_v20  ;;  %v329_v50 = vmax.f32 %v297_v39, 0.0 }
  0xf6   :  { %v236_v2 = vpop.permute.xlu1 %235  ;;  %v232_v4 = vpop.permute.xlu0 %231 }
  0xf7   :  { %v354_v45 = vmul.f32 %v322_v22, %v1314_v1  ;;  %v382_v59 = vrot.slane %v381_v44, 4  ;;  %v304_v61 = vadd.f32 %v236_v2, %v1286_v33  ;;  %v303_v62 = vadd.f32 %v232_v4, %v1290_v36 }
  0xf8   :  { %v361_v14 = vmul.f32 %v329_v50, %v1309_v57  ;;  %v406_v4 = vadd.f32 %v360_v63, %v359_v0 }
  0xf9   :  { %v390_v60 = vadd.f32 %v389_v52, %v354_v45  ;;  %v383_v18 = vadd.f32 %v382_v59, %v381_v44  ;;  %v336_v2 = vmax.f32 %v304_v61, 0.0  ;;  %v335_v22 = vmax.f32 %v303_v62, 0.0 }
  0xfa   :  { %v221_v27 = vpop.permute.xlu1 %220  ;;  %v187_v28 = vpop.permute.xlu0 %186  ;;  %v407_v35 = vadd.f32 %v406_v4, %v361_v14 }
  0xfb   :  { %v294_v42 = vadd.f32 %v187_v28, %v1295_v40  ;;  %v301_v41 = vadd.f32 %v221_v27, %v1292_v37  ;;  %v391_v20 = vrot.slane %v390_v60, 4  ;;  %v363_v28 = vmul.f32 %v331_v10, %v1307_v56 }
  0xfc   :  { %v384_v43 = vrot.slane %v383_v18, 2  ;;  %v368_v45 = vmul.f32 %v336_v2, %v1301_v47  ;;  %v367_v31 = vmul.f32 %v335_v22, %v1307_v56 }
  0xfd   :  { %v326_v48 = vmax.f32 %v294_v42, 0.0  ;;  %v333_v27 = vmax.f32 %v301_v41, 0.0  ;;  %v392_v44 = vadd.f32 %v391_v20, %v390_v60 }
  0xfe   :  { %v255_v49 = vpop.permute.xlu1 %254  ;;  %v251_v51 = vpop.permute.xlu0 %250  ;;  %v1354_v0 = vadd.f32 %v384_v43, %v383_v18 }
  0xff   :  { %v358_v58 = vmul.f32 %v326_v48, %v1314_v1  ;;  %v308_v46 = vadd.f32 %v255_v49, %v1286_v33  ;;  %v307_v32 = vadd.f32 %v251_v51, %v1290_v36  ;;  %v365_v50 = vmul.f32 %v333_v27, %v1309_v57 }
 0x100   :  { %v393_v49 = vrot.slane %v392_v44, 2 }
 0x101   :  { %v399_v12 = vadd.f32 %v398_v55, %v358_v58  ;;  %v415_v55 = vadd.f32 %v364_v29, %v363_v28  ;;  %v339_v10 = vmax.f32 %v307_v32, 0.0 }
 0x102   :  { %v240_v5 = vpop.permute.xlu1 %239  ;;  %v206_v9 = vpop.permute.xlu0 %205  ;;  %v394_v27 = vadd.f32 %v393_v49, %v392_v44 }
 0x103   :  { %v298_v16 = vadd.f32 %v206_v9, %v1295_v40  ;;  %v305_v23 = vadd.f32 %v240_v5, %v1292_v37  ;;  %v400_v30 = vrot.slane %v399_v12, 4  ;;  %v424_v5 = vadd.f32 %v368_v45, %v367_v31 }
 0x104   :  { %v340_v9 = vmax.f32 %v308_v46, 0.0 }
 0x105   :  { %v330_v24 = vmax.f32 %v298_v16, 0.0  ;;  %v337_v48 = vmax.f32 %v305_v23, 0.0  ;;  %v401_v58 = vadd.f32 %v400_v30, %v399_v12  ;;  %v416_v12 = vadd.f32 %v415_v55, %v365_v50 }
 0x106   :  { %v274_v25 = vpop.permute.xlu1 %273  ;;  %v270_v26 = vpop.permute.xlu0 %269  ;;  %v372_v30 = vmul.f32 %v340_v9, %v1301_v47 }
 0x107   :  { %v362_v38 = vmul.f32 %v330_v24, %v1314_v1  ;;  %v312_v39 = vadd.f32 %v274_v25, %v1286_v33  ;;  %v311_v42 = vadd.f32 %v270_v26, %v1290_v36  ;;  %v369_v34 = vmul.f32 %v337_v48, %v1309_v57 }
 0x108   :  { %v402_v4 = vrot.slane %v401_v58, 2 }
 0x109   :  { %v408_v52 = vadd.f32 %v407_v35, %v362_v38  ;;  %v344_v60 = vmax.f32 %v312_v39, 0.0  ;;  %v343_v62 = vmax.f32 %v311_v42, 0.0  ;;  %v371_v35 = vmul.f32 %v339_v10, %v1307_v56 }
 0x10a   :  { %v259_v53 = vpop.permute.xlu1 %258  ;;  %v225_v54 = vpop.permute.xlu0 %224  ;;  %v425_v38 = vadd.f32 %v424_v5, %v369_v34  ;;  %v403_v32 = vadd.f32 %v402_v4, %v401_v58  ;;  %v386_v58 = vrot.slane %v1354_v0, 1 }
 0x10b   :  { %v302_v59 = vadd.f32 %v225_v54, %v1295_v40  ;;  %v409_v61 = vrot.slane %v408_v52, 4  ;;  %v309_v63 = vadd.f32 %v259_v53, %v1292_v37  ;;  %v376_v18 = vmul.f32 %v344_v60, %v1301_v47 }
 0x10c   :  { %v375_v23 = vmul.f32 %v343_v62, %v1307_v56 }
 0x10d   :  { %v334_v51 = vmax.f32 %v302_v59, 0.0  ;;  %v410_v41 = vadd.f32 %v409_v61, %v408_v52  ;;  %v341_v24 = vmax.f32 %v309_v63, 0.0  ;;  %v395_v59 = vrot.slane %v394_v27, 1 }
 0x10e   :  { %v278_v14 = vpop.permute.xlu1 %277  ;;  %v244_v16 = vpop.permute.xlu0 %243  ;;  %v442_v48 = vadd.f32 %v376_v18, %v375_v23  ;;  %v433_v61 = vadd.f32 %v372_v30, %v371_v35 }
 0x10f   :  { %v366_v20 = vmul.f32 %v334_v51, %v1314_v1  ;;  %v313_v2 = vadd.f32 %v278_v14, %v1292_v37  ;;  %v306_v22 = vadd.f32 %v244_v16, %v1295_v40  ;;  %v411_v25 = vrot.slane %v410_v41, 2 }
 0x110   :  { %v373_v52 = vmul.f32 %v341_v24, %v1309_v57  ;;  %v404_v51 = vrot.slane %v403_v32, 1  ;;  %v387_v24 = vadd.f32 %v386_v58, %v1354_v0 }
 0x111   :  { %v417_v26 = vadd.f32 %v416_v12, %v366_v20  ;;  %v345_v28 = vmax.f32 %v313_v2, 0.0  ;;  %v338_v29 = vmax.f32 %v306_v22, 0.0  ;;  %v412_v53 = vadd.f32 %v411_v25, %v410_v41 }
 0x112   :  { %v282_v39 = vpop.permute.xlu1 %281  ;;  %v263_v42 = vpop.permute.xlu0 %262  ;;  %v434_v9 = vadd.f32 %v433_v61, %v373_v52  ;;  %v396_v20 = vadd.f32 %v395_v59, %v394_v27  ;;  %v405_v18 = vadd.f32 %v404_v51, %v403_v32 }
 0x113   :  { %v418_v43 = vrot.slane %v417_v26, 4  ;;  %v377_v45 = vmul.f32 %v345_v28, %v1309_v57  ;;  %v370_v31 = vmul.f32 %v338_v29, %v1314_v1  ;;  %v314_v46 = vadd.f32 %v282_v39, %v1295_v40 }
 0x114   :  { %v310_v44 = vadd.f32 %v263_v42, %v1295_v40  ;;  %v413_v34 = vrot.slane %v412_v53, 1  ;;  %v1373_v29 = vstv %s123_s2 }
 0x115   :  { %v419_v54 = vadd.f32 %v418_v43, %v417_v26  ;;  %v426_v55 = vadd.f32 %v425_v38, %v370_v31  ;;  %v346_v50 = vmax.f32 %v314_v46, 0.0  ;;  %v443_v63 = vadd.f32 %v442_v48, %v377_v45 }
 0x116   :  { %v342_v60 = vmax.f32 %v310_v44, 0.0  ;;  %v414_v25 = vadd.f32 %v413_v34, %v412_v53  ;;  %v453_v38 = vadd.f32 %v1373_v29, %v396_v20  ;;  %v454_v27 = vadd.f32 %v1373_v29, %v405_v18 }
 0x117   :  { %v420_v62 = vrot.slane %v419_v54, 2  ;;  %v427_v49 = vrot.slane %v426_v55, 4  ;;  %v378_v5 = vmul.f32 %v346_v50, %v1314_v1  ;;  %v452_v45 = vadd.f32 %v1373_v29, %v387_v24 }
 0x118   :  { %v374_v10 = vmul.f32 %v342_v60, %v1314_v1  ;;  %v455_v31 = vadd.f32 %v1373_v29, %v414_v25  ;;  %v463_v52 = vsub.f32 0.0, %v453_v38 }
 0x119   :  { %v421_v41 = vadd.f32 %v420_v62, %v419_v54  ;;  %v428_v14 = vadd.f32 %v427_v49, %v426_v55  ;;  %v444_v16 = vadd.f32 %v443_v63, %v378_v5  ;;  %v464_v54 = vsub.f32 0.0, %v454_v27 }
 0x11a   :  { %v435_v12 = vadd.f32 %v434_v9, %v374_v10  ;;  %v462_v50 = vsub.f32 0.0, %v452_v45  ;;  %v501_v59 = vsel %vm478_vm0, %v453_v38, %v452_v45  ;;  %v465_v61 = vsub.f32 0.0, %v455_v31 }
 0x11b   :  { %v422_v2 = vrot.slane %v421_v41, 1  ;;  %v429_v22 = vrot.slane %v428_v14, 2  ;;  %v445_v4 = vrot.slane %v444_v16, 4  ;;  %v502_v62 = vsel %vm480_vm1, %v454_v27, %v501_v59 }
 0x11c   :  { %v436_v23 = vrot.slane %v435_v12, 4  ;;  %v479_v5 = vsel %vm478_vm0, %v463_v52, %v462_v50  ;;  %v503_v58 = vsel %vm482_vm2, %v455_v31, %v502_v62 }
 0x11d   :  { %v430_v26 = vadd.f32 %v429_v22, %v428_v14  ;;  %v446_v28 = vadd.f32 %v445_v4, %v444_v16  ;;  %v423_v30 = vadd.f32 %v422_v2, %v421_v41  ;;  %v481_v10 = vsel %vm480_vm1, %v464_v54, %v479_v5  ;;  %v460_v41 = vld [vmem:[#allocation14] sm:$0xff] }
 0x11e   :  { %v437_v35 = vadd.f32 %v436_v23, %v435_v12  ;;  %v483_v16 = vsel %vm482_vm2, %v465_v61, %v481_v10  ;;  %vm461_vm7 = vcmp.ne.f32.partialorder %v460_v41, 0.0 }
 0x11f   :  { %v431_v39 = vrot.slane %v430_v26, 1  ;;  %v447_v42 = vrot.slane %v446_v28, 2  ;;  %v456_v32 = vadd.f32 %v1373_v29, %v423_v30 }
 0x120   :  { %v438_v43 = vrot.slane %v437_v35, 2 }
 0x121   :  { %v432_v46 = vadd.f32 %v431_v39, %v430_v26  ;;  %v448_v0 = vadd.f32 %v447_v42, %v446_v28  ;;  %v466_v63 = vsub.f32 0.0, %v456_v32  ;;  %v504_v34 = vsel %vm484_vm3, %v456_v32, %v503_v58 }
 0x122   :  { %v439_v48 = vadd.f32 %v438_v43, %v437_v35 }
 0x123   :  { %v457_v44 = vadd.f32 %v1373_v29, %v432_v46  ;;  %v449_v53 = vrot.slane %v448_v0, 1  ;;  %v485_v2 = vsel %vm484_vm3, %v466_v63, %v483_v16 }
 0x124   :  { %v440_v55 = vrot.slane %v439_v48, 1 }
 0x125   :  { %v450_v60 = vadd.f32 %v449_v53, %v448_v0  ;;  %v467_v51 = vsub.f32 0.0, %v457_v44  ;;  %v505_v12 = vsel %vm486_vm4, %v457_v44, %v504_v34 }
 0x126   :  { %v441_v49 = vadd.f32 %v440_v55, %v439_v48 }
 0x127   :  { %v459_v9 = vadd.f32 %v1373_v29, %v450_v60  ;;  %v487_v18 = vsel %vm486_vm4, %v467_v51, %v485_v2 }
 0x128   :  { %v458_v14 = vadd.f32 %v1373_v29, %v441_v49 }
 0x129   :  { %v469_v20 = vsub.f32 0.0, %v459_v9 }
 0x12a   :  { %v468_v22 = vsub.f32 0.0, %v458_v14  ;;  %v506_v4 = vsel %vm488_vm5, %v458_v14, %v505_v12 }
 0x12b   :  { %v507_v25 = vsel %vm490_vm6, %v459_v9, %v506_v4 }
 0x12c   :  { %v489_v23 = vsel %vm488_vm5, %v468_v22, %v487_v18 }
 0x12d   :  { %v491_v24 = vsel %vm490_vm6, %v469_v20, %v489_v23 }
 0x12e   :  { %v509_v26 = vsel %vm461_vm7, %v491_v24, %v507_v25 }
 0x12f   :  { %v511_v28 = vand.u32 2147483647, %v509_v26  ;;  %v510_v27 = vmax.f32 %v509_v26, 0.0 }
 0x131   :  { %v512_v30 = vsub.f32 0.0, %v511_v28 }
 0x133   :  { %v513_v35 = vmul.f32 1.442695, %v512_v30 }
 0x135   :  { %997 = vpow2.f32 %v513_v35 }
 0x142   :  { %v998_v38 = vpop.eup %997 }
 0x143   :  { %v515_v39 = vadd.f32 1.0, %v998_v38 }
 0x145   :  { %999 = vlog2.f32 %v515_v39 }
 0x151   :  { %521 = sbr.rel (%p983_p8) target bundleno = 351 (0x15f), region = 45 }
 0x152   :  { %v1000_v42 = vpop.eup %999 }
 0x153   :  { %v517_v43 = vmul.f32 0.6931472, %v1000_v42 }
 0x155   :  { %v518_v45 = vadd.f32 %v517_v43, %v510_v27 }
 0x156   :  { %v525_v31 = vstv %s981_s1  ;;  %vm528_vm8 = vcmp.lt.s32.totalorder %v1260_v7, 16  ;;  %v530_v0 = vld [vmem:[#allocation16] sm:$0xff] }
 0x157   :  { %v526_v46 = vadd.s32 %v525_v31, %v1257_v3 }
 0x159   :  { %vm527_vm9 = vcmp.lt.s32.totalorder %v526_v46, %v1260_v7 }
 0x15a   :  { %vm529_vm10 = vmand %vm527_vm9, %vm528_vm8 }
 0x15b   :  { %v531_v32 = vsel %vm529_vm10, %v518_v45, 0.0 }
 0x15c   :  { %v532_v48 = vadd.f32 %v531_v32, %v530_v0 }
 0x15e   :  { %533 = vst [vmem:[#allocation16] sm:$0xff] %v532_v48 }
 0x15f PF:  { %p984_p9 = scmp.ne.s32.totalorder %s1543_s3, 0 }
 0x161   :  { %537 = sbr.rel (%p984_p9) target bundleno = 362 (0x16a), region = 49 }
 0x166   :  { %v538_v52 = vld [vmem:[#allocation16] sm:$0xff] }
 0x167   :  { %v539_v44 = vadd.f32 %v538_v52, %v518_v45 }
 0x169   :  { %540 = vst [vmem:[#allocation16] sm:$0xff] %v539_v44 }
 0x16a PF:  { %v542_v53 = vld [vmem:[#allocation8 + $0x8] sm:$0xff]  ;;  %s927_s8 = sadd.s32 (!%p983_p8), 8, %s981_s1 }
 0x16b   :  { %v565_v54 = vrot.slane %v542_v53, %v152_v6  ;;  %v546_v55 = vrot.slane %v542_v53, %v133_v8  ;;  %v584_v50 = vrot.slane %v542_v53, %v171_v11  ;;  %v603_v59 = vrot.slane %v542_v53, %v190_v13 }
 0x16c   :  { %v622_v6 = vrot.slane %v542_v53, %v209_v15  ;;  %v641_v8 = vrot.slane %v542_v53, %v228_v17  ;;  %v660_v11 = vrot.slane %v542_v53, %v247_v19  ;;  %v679_v13 = vrot.slane %v542_v53, %v266_v21 }
 0x16d   :  { %567 = vbcast.lane.b32.xlu1 %v565_v54, 256  ;;  %548 = vbcast.lane.b32.xlu0 %v546_v55, 256 }
 0x171   :  { %571 = vbcast.lane.b32.xlu1 %v565_v54, 264  ;;  %552 = vbcast.lane.b32.xlu0 %v546_v55, 264 }
 0x175   :  { %590 = vbcast.lane.b32.xlu1 %v584_v50, 264  ;;  %586 = vbcast.lane.b32.xlu0 %v584_v50, 256 }
 0x179   :  { %575 = vbcast.lane.b32.xlu1 %v565_v54, 272  ;;  %556 = vbcast.lane.b32.xlu0 %v546_v55, 272 }
 0x17d   :  { %609 = vbcast.lane.b32.xlu1 %v603_v59, 264  ;;  %605 = vbcast.lane.b32.xlu0 %v603_v59, 256 }
 0x181   :  { %624 = vbcast.lane.b32.xlu1 %v622_v6, 256  ;;  %594 = vbcast.lane.b32.xlu0 %v584_v50, 272 }
 0x185   :  { %560 = vbcast.lane.b32.xlu1 %v546_v55, 280  ;;  %628 = vbcast.lane.b32.xlu0 %v622_v6, 264 }
 0x189   :  { %613 = vbcast.lane.b32.xlu1 %v603_v59, 272  ;;  %579 = vbcast.lane.b32.xlu0 %v565_v54, 280 }
 0x18d   :  { %647 = vbcast.lane.b32.xlu1 %v641_v8, 264  ;;  %643 = vbcast.lane.b32.xlu0 %v641_v8, 256 }
 0x191   :  { %632 = vbcast.lane.b32.xlu1 %v622_v6, 272  ;;  %598 = vbcast.lane.b32.xlu0 %v584_v50, 280 }
 0x195   :  { %666 = vbcast.lane.b32.xlu1 %v660_v11, 264  ;;  %662 = vbcast.lane.b32.xlu0 %v660_v11, 256 }
 0x199   :  { %651 = vbcast.lane.b32.xlu1 %v641_v8, 272  ;;  %617 = vbcast.lane.b32.xlu0 %v603_v59, 280 }
 0x19d   :  { %685 = vbcast.lane.b32.xlu1 %v679_v13, 264  ;;  %681 = vbcast.lane.b32.xlu0 %v679_v13, 256 }
 0x1a1   :  { %670 = vbcast.lane.b32.xlu1 %v660_v11, 272  ;;  %636 = vbcast.lane.b32.xlu0 %v622_v6, 280 }
 0x1a5   :  { %689 = vbcast.lane.b32.xlu1 %v679_v13, 272  ;;  %655 = vbcast.lane.b32.xlu0 %v641_v8, 280 }
 0x1a9   :  { %693 = vbcast.lane.b32.xlu1 %v679_v13, 280  ;;  %674 = vbcast.lane.b32.xlu0 %v660_v11, 280 }
 0x1df   :  { %v568_v15 = vpop.permute.xlu1 %567  ;;  %v549_v17 = vpop.permute.xlu0 %548 }
 0x1e0   :  { %v695_v41 = vadd.f32 %v549_v17, %v1290_v36  ;;  %v699_v23 = vadd.f32 %v568_v15, %v1290_v36 }
 0x1e2   :  { %v727_v24 = vmax.f32 %v695_v41, 0.0  ;;  %v731_v31 = vmax.f32 %v699_v23, 0.0 }
 0x1e3   :  { %v572_v61 = vpop.permute.xlu1 %571  ;;  %v553_v60 = vpop.permute.xlu0 %552 }
 0x1e4   :  { %v696_v9 = vadd.f32 %v553_v60, %v1286_v33  ;;  %v700_v16 = vadd.f32 %v572_v61, %v1286_v33  ;;  %v759_v46 = vmul.f32 %v727_v24, %v1307_v56  ;;  %v763_v13 = vmul.f32 %v731_v31, %v1307_v56 }
 0x1e6   :  { %v728_v12 = vmax.f32 %v696_v9, 0.0  ;;  %v732_v30 = vmax.f32 %v700_v16, 0.0 }
 0x1e7   :  { %v591_v19 = vpop.permute.xlu1 %590  ;;  %v587_v62 = vpop.permute.xlu0 %586 }
 0x1e8   :  { %v704_v2 = vadd.f32 %v591_v19, %v1286_v33  ;;  %v703_v22 = vadd.f32 %v587_v62, %v1290_v36  ;;  %v760_v35 = vmul.f32 %v728_v12, %v1301_v47  ;;  %v764_v52 = vmul.f32 %v732_v30, %v1301_v47 }
 0x1ea   :  { %v736_v42 = vmax.f32 %v704_v2, 0.0  ;;  %v735_v27 = vmax.f32 %v703_v22, 0.0  ;;  %v791_v44 = vadd.f32 %v760_v35, %v759_v46  ;;  %v800_v62 = vadd.f32 %v764_v52, %v763_v13 }
 0x1eb   :  { %v576_v63 = vpop.permute.xlu1 %575  ;;  %v557_v49 = vpop.permute.xlu0 %556 }
 0x1ec   :  { %v697_v14 = vadd.f32 %v557_v49, %v1292_v37  ;;  %v701_v25 = vadd.f32 %v576_v63, %v1292_v37  ;;  %v768_v55 = vmul.f32 %v736_v42, %v1301_v47  ;;  %v767_v50 = vmul.f32 %v735_v27, %v1307_v56 }
 0x1ee   :  { %v729_v26 = vmax.f32 %v697_v14, 0.0  ;;  %v733_v0 = vmax.f32 %v701_v25, 0.0 }
 0x1ef   :  { %v610_v5 = vpop.permute.xlu1 %609  ;;  %v606_v58 = vpop.permute.xlu0 %605 }
 0x1f0   :  { %v761_v32 = vmul.f32 %v729_v26, %v1309_v57  ;;  %v708_v59 = vadd.f32 %v610_v5, %v1286_v33  ;;  %v707_v6 = vadd.f32 %v606_v58, %v1290_v36  ;;  %v765_v15 = vmul.f32 %v733_v0, %v1309_v57 }
 0x1f1   :  { %v809_v5 = vadd.f32 %v768_v55, %v767_v50 }
 0x1f2   :  { %v792_v17 = vadd.f32 %v791_v44, %v761_v32  ;;  %v739_v58 = vmax.f32 %v707_v6, 0.0  ;;  %v801_v14 = vadd.f32 %v800_v62, %v765_v15 }
 0x1f3   :  { %v625_v51 = vpop.permute.xlu1 %624  ;;  %v595_v21 = vpop.permute.xlu0 %594 }
 0x1f4   :  { %v705_v28 = vadd.f32 %v595_v21, %v1292_v37  ;;  %v740_v21 = vmax.f32 %v708_v59, 0.0  ;;  %v711_v16 = vadd.f32 %v625_v51, %v1290_v36  ;;  %v771_v26 = vmul.f32 %v739_v58, %v1307_v56 }
 0x1f6   :  { %v737_v48 = vmax.f32 %v705_v28, 0.0  ;;  %v772_v25 = vmul.f32 %v740_v21, %v1301_v47  ;;  %v743_v35 = vmax.f32 %v711_v16, 0.0 }
 0x1f7   :  { %v561_v10 = vpop.permute.xlu1 %560  ;;  %v629_v34 = vpop.permute.xlu0 %628 }
 0x1f8   :  { %v698_v20 = vadd.f32 %v561_v10, %v1295_v40  ;;  %v769_v61 = vmul.f32 %v737_v48, %v1309_v57  ;;  %v712_v12 = vadd.f32 %v629_v34, %v1286_v33  ;;  %v775_v44 = vmul.f32 %v743_v35, %v1307_v56 }
 0x1fa   :  { %v730_v38 = vmax.f32 %v698_v20, 0.0  ;;  %v810_v20 = vadd.f32 %v809_v5, %v769_v61  ;;  %v744_v51 = vmax.f32 %v712_v12, 0.0 }
 0x1fb   :  { %v614_v4 = vpop.permute.xlu1 %613  ;;  %v580_v18 = vpop.permute.xlu0 %579 }
 0x1fc   :  { %v702_v39 = vadd.f32 %v580_v18, %v1295_v40  ;;  %v762_v53 = vmul.f32 %v730_v38, %v1314_v1  ;;  %v709_v60 = vadd.f32 %v614_v4, %v1292_v37 }
 0x1fe   :  { %v734_v54 = vmax.f32 %v702_v39, 0.0  ;;  %v793_v63 = vadd.f32 %v792_v17, %v762_v53  ;;  %v741_v2 = vmax.f32 %v709_v60, 0.0  ;;  %v776_v53 = vmul.f32 %v744_v51, %v1301_v47 }
 0x1ff   :  { %v648_v43 = vpop.permute.xlu1 %647  ;;  %v644_v45 = vpop.permute.xlu0 %643 }
 0x200   :  { %v766_v49 = vmul.f32 %v734_v54, %v1314_v1  ;;  %v794_v4 = vrot.slane %v793_v63, 4  ;;  %v716_v23 = vadd.f32 %v648_v43, %v1286_v33  ;;  %v715_v24 = vadd.f32 %v644_v45, %v1290_v36 }
 0x201   :  { %v773_v39 = vmul.f32 %v741_v2, %v1309_v57  ;;  %v818_v45 = vadd.f32 %v772_v25, %v771_v26  ;;  %v827_v5 = vadd.f32 %v776_v53, %v775_v44 }
 0x202   :  { %v802_v18 = vadd.f32 %v801_v14, %v766_v49  ;;  %v795_v27 = vadd.f32 %v794_v4, %v793_v63  ;;  %v748_v43 = vmax.f32 %v716_v23, 0.0  ;;  %v747_v46 = vmax.f32 %v715_v24, 0.0 }
 0x203   :  { %v633_v8 = vpop.permute.xlu1 %632  ;;  %v599_v11 = vpop.permute.xlu0 %598  ;;  %v819_v50 = vadd.f32 %v818_v45, %v773_v39 }
 0x204   :  { %v706_v19 = vadd.f32 %v599_v11, %v1295_v40  ;;  %v713_v34 = vadd.f32 %v633_v8, %v1292_v37  ;;  %v803_v31 = vrot.slane %v802_v18, 4  ;;  %v796_v11 = vrot.slane %v795_v27, 2 }
 0x205   :  { %v780_v15 = vmul.f32 %v748_v43, %v1301_v47  ;;  %v779_v17 = vmul.f32 %v747_v46, %v1307_v56 }
 0x206   :  { %v738_v9 = vmax.f32 %v706_v19, 0.0  ;;  %v745_v54 = vmax.f32 %v713_v34, 0.0  ;;  %v804_v13 = vadd.f32 %v803_v31, %v802_v18  ;;  %v797_v2 = vadd.f32 %v796_v11, %v795_v27 }
 0x207   :  { %v667_v10 = vpop.permute.xlu1 %666  ;;  %v663_v41 = vpop.permute.xlu0 %662 }
 0x208   :  { %v770_v22 = vmul.f32 %v738_v9, %v1314_v1  ;;  %v720_v61 = vadd.f32 %v667_v10, %v1286_v33  ;;  %v719_v60 = vadd.f32 %v663_v41, %v1290_v36  ;;  %v777_v21 = vmul.f32 %v745_v54, %v1309_v57 }
 0x20a   :  { %v811_v38 = vadd.f32 %v810_v20, %v770_v22  ;;  %v805_v22 = vrot.slane %v804_v13, 2  ;;  %v751_v41 = vmax.f32 %v719_v60, 0.0  ;;  %v828_v25 = vadd.f32 %v827_v5, %v777_v21 }
 0x20b   :  { %v652_v28 = vpop.permute.xlu1 %651  ;;  %v618_v30 = vpop.permute.xlu0 %617 }
 0x20c   :  { %v710_v42 = vadd.f32 %v618_v30, %v1295_v40  ;;  %v717_v0 = vadd.f32 %v652_v28, %v1292_v37  ;;  %v812_v55 = vrot.slane %v811_v38, 4  ;;  %v806_v43 = vadd.f32 %v805_v22, %v804_v13 }
 0x20d   :  { %v783_v45 = vmul.f32 %v751_v41, %v1307_v56 }
 0x20e   :  { %v742_v32 = vmax.f32 %v710_v42, 0.0  ;;  %v749_v19 = vmax.f32 %v717_v0, 0.0  ;;  %v813_v58 = vadd.f32 %v812_v55, %v811_v38  ;;  %v807_v11 = vrot.slane %v806_v43, 1 }
 0x20f   :  { %v686_v48 = vpop.permute.xlu1 %685  ;;  %v682_v52 = vpop.permute.xlu0 %681 }
 0x210   :  { %v774_v59 = vmul.f32 %v742_v32, %v1314_v1  ;;  %v724_v6 = vadd.f32 %v686_v48, %v1286_v33  ;;  %v723_v8 = vadd.f32 %v682_v52, %v1290_v36  ;;  %v836_v33 = vadd.f32 %v780_v15, %v779_v17 }
 0x211   :  { %v752_v36 = vmax.f32 %v720_v61, 0.0  ;;  %v781_v4 = vmul.f32 %v749_v19, %v1309_v57  ;;  %v814_v35 = vrot.slane %v813_v58, 2 }
 0x212   :  { %v820_v62 = vadd.f32 %v819_v50, %v774_v59  ;;  %v756_v16 = vmax.f32 %v724_v6, 0.0  ;;  %v755_v12 = vmax.f32 %v723_v8, 0.0 }
 0x213   :  { %v671_v63 = vpop.permute.xlu1 %670  ;;  %v637_v49 = vpop.permute.xlu0 %636  ;;  %v784_v46 = vmul.f32 %v752_v36, %v1301_v47  ;;  %v837_v0 = vadd.f32 %v836_v33, %v781_v4  ;;  %v815_v54 = vadd.f32 %v814_v35, %v813_v58 }
 0x214   :  { %v714_v9 = vadd.f32 %v637_v49, %v1295_v40  ;;  %v821_v14 = vrot.slane %v820_v62, 4  ;;  %v721_v20 = vadd.f32 %v671_v63, %v1292_v37  ;;  %v788_v51 = vmul.f32 %v756_v16, %v1301_v47 }
 0x215   :  { %v787_v34 = vmul.f32 %v755_v12, %v1307_v56  ;;  %v845_v13 = vadd.f32 %v784_v46, %v783_v45  ;;  %v816_v63 = vrot.slane %v815_v54, 1 }
 0x216   :  { %v746_v10 = vmax.f32 %v714_v9, 0.0  ;;  %v822_v18 = vadd.f32 %v821_v14, %v820_v62  ;;  %v753_v38 = vmax.f32 %v721_v20, 0.0  ;;  %v798_v62 = vrot.slane %v797_v2, 1 }
 0x217   :  { %v690_v23 = vpop.permute.xlu1 %689  ;;  %v656_v24 = vpop.permute.xlu0 %655  ;;  %v854_v55 = vadd.f32 %v788_v51, %v787_v34  ;;  %v808_v14 = vadd.f32 %v807_v11, %v806_v43  ;;  %v817_v22 = vadd.f32 %v816_v63, %v815_v54 }
 0x218   :  { %v778_v26 = vmul.f32 %v746_v10, %v1314_v1  ;;  %v725_v28 = vadd.f32 %v690_v23, %v1292_v37  ;;  %v718_v30 = vadd.f32 %v656_v24, %v1295_v40  ;;  %v823_v39 = vrot.slane %v822_v18, 2 }
 0x219   :  { %v785_v50 = vmul.f32 %v753_v38, %v1309_v57  ;;  %v799_v10 = vadd.f32 %v798_v62, %v797_v2  ;;  %v864_v24 = vadd.f32 %v808_v14, %v1373_v29 }
 0x21a   :  { %v829_v42 = vadd.f32 %v828_v25, %v778_v26  ;;  %v757_v27 = vmax.f32 %v725_v28, 0.0  ;;  %v750_v31 = vmax.f32 %v718_v30, 0.0  ;;  %v824_v6 = vadd.f32 %v823_v39, %v822_v18 }
 0x21b   :  { %v694_v32 = vpop.permute.xlu1 %693  ;;  %v675_v37 = vpop.permute.xlu0 %674  ;;  %v846_v49 = vadd.f32 %v845_v13, %v785_v50  ;;  %v865_v26 = vadd.f32 %v817_v22, %v1373_v29  ;;  %v863_v30 = vadd.f32 %v799_v10, %v1373_v29  ;;  %v875_v39 = vsub.f32 0.0, %v864_v24 }
 0x21c   :  { %v830_v48 = vrot.slane %v829_v42, 4  ;;  %v789_v52 = vmul.f32 %v757_v27, %v1309_v57  ;;  %v782_v44 = vmul.f32 %v750_v31, %v1314_v1  ;;  %v726_v53 = vadd.f32 %v694_v32, %v1295_v40 }
 0x21d   :  { %v722_v59 = vadd.f32 %v675_v37, %v1295_v40  ;;  %v825_v57 = vrot.slane %v824_v6, 1  ;;  %v876_v31 = vsub.f32 0.0, %v865_v26  ;;  %v874_v46 = vsub.f32 0.0, %v863_v30 }
 0x21e   :  { %v831_v47 = vadd.f32 %v830_v48, %v829_v42  ;;  %v838_v8 = vadd.f32 %v837_v0, %v782_v44  ;;  %v758_v56 = vmax.f32 %v726_v53, 0.0  ;;  %v855_v61 = vadd.f32 %v854_v55, %v789_v52 }
 0x21f   :  { %v754_v15 = vmax.f32 %v722_v59, 0.0  ;;  %v826_v36 = vadd.f32 %v825_v57, %v824_v6  ;;  %v906_v45 = vsel %vm478_vm0, %v864_v24, %v863_v30  ;;  %v890_v44 = vsel %vm478_vm0, %v875_v39, %v874_v46  ;;  %v872_v6 = vld [vmem:[#allocation14 + $0x8] sm:$0xff] }
 0x220   :  { %v832_v17 = vrot.slane %v831_v47, 2  ;;  %v839_v60 = vrot.slane %v838_v8, 4  ;;  %v790_v19 = vmul.f32 %v758_v56, %v1314_v1  ;;  %v907_v37 = vsel %vm480_vm1, %v865_v26, %v906_v45 }
 0x221   :  { %v786_v5 = vmul.f32 %v754_v15, %v1314_v1  ;;  %v866_v35 = vadd.f32 %v826_v36, %v1373_v29  ;;  %v891_v50 = vsel %vm480_vm1, %v876_v31, %v890_v44  ;;  %vm873_vm11 = vcmp.ne.f32.partialorder %v872_v6, 0.0 }
 0x222   :  { %v833_v21 = vadd.f32 %v832_v17, %v831_v47  ;;  %v840_v40 = vadd.f32 %v839_v60, %v838_v8  ;;  %v856_v58 = vadd.f32 %v855_v61, %v790_v19 }
 0x223   :  { %v847_v9 = vadd.f32 %v846_v49, %v786_v5  ;;  %v877_v0 = vsub.f32 0.0, %v866_v35  ;;  %v908_v53 = vsel %vm482_vm2, %v866_v35, %v907_v37 }
 0x224   :  { %v834_v16 = vrot.slane %v833_v21, 1  ;;  %v841_v12 = vrot.slane %v840_v40, 2  ;;  %v857_v20 = vrot.slane %v856_v58, 4 }
 0x225   :  { %v848_v33 = vrot.slane %v847_v9, 4  ;;  %v892_v8 = vsel %vm482_vm2, %v877_v0, %v891_v50 }
 0x226   :  { %v842_v41 = vadd.f32 %v841_v12, %v840_v40  ;;  %v858_v4 = vadd.f32 %v857_v20, %v856_v58  ;;  %v835_v18 = vadd.f32 %v834_v16, %v833_v21 }
 0x227   :  { %v849_v23 = vadd.f32 %v848_v33, %v847_v9 }
 0x228   :  { %v843_v1 = vrot.slane %v842_v41, 1  ;;  %v859_v25 = vrot.slane %v858_v4, 2  ;;  %v867_v2 = vadd.f32 %v835_v18, %v1373_v29 }
 0x229   :  { %v850_v28 = vrot.slane %v849_v23, 2 }
 0x22a   :  { %v844_v51 = vadd.f32 %v843_v1, %v842_v41  ;;  %v860_v34 = vadd.f32 %v859_v25, %v858_v4  ;;  %v878_v48 = vsub.f32 0.0, %v867_v2  ;;  %v909_v59 = vsel %vm484_vm3, %v867_v2, %v908_v53 }
 0x22b   :  { %v851_v38 = vadd.f32 %v850_v28, %v849_v23 }
 0x22c   :  { %v868_v42 = vadd.f32 %v844_v51, %v1373_v29  ;;  %v861_v27 = vrot.slane %v860_v34, 1  ;;  %v893_v13 = vsel %vm484_vm3, %v878_v48, %v892_v8 }
 0x22d   :  { %v852_v43 = vrot.slane %v851_v38, 1 }
 0x22e   :  { %v862_v32 = vadd.f32 %v861_v27, %v860_v34  ;;  %v879_v54 = vsub.f32 0.0, %v868_v42  ;;  %v910_v56 = vsel %vm486_vm4, %v868_v42, %v909_v59 }
 0x22f   :  { %v853_v52 = vadd.f32 %v852_v43, %v851_v38 }
 0x230   :  { %v870_v55 = vadd.f32 %v862_v32, %v1373_v29  ;;  %v894_v61 = vsel %vm486_vm4, %v879_v54, %v893_v13 }
 0x231   :  { %v869_v47 = vadd.f32 %v853_v52, %v1373_v29 }
 0x232   :  { %v881_v11 = vsub.f32 0.0, %v870_v55 }
 0x233   :  { %v880_v15 = vsub.f32 0.0, %v869_v47  ;;  %v911_v17 = vsel %vm488_vm5, %v869_v47, %v910_v56 }
 0x234   :  { %v912_v62 = vsel %vm490_vm6, %v870_v55, %v911_v17 }
 0x235   :  { %v895_v60 = vsel %vm488_vm5, %v880_v15, %v894_v61 }
 0x236   :  { %v896_v19 = vsel %vm490_vm6, %v881_v11, %v895_v60 }
 0x237   :  { %v914_v29 = vsel %vm873_vm11, %v896_v19, %v912_v62 }
 0x238   :  { %v916_v63 = vand.u32 2147483647, %v914_v29  ;;  %v915_v58 = vmax.f32 %v914_v29, 0.0 }
 0x23a   :  { %v917_v49 = vsub.f32 0.0, %v916_v63 }
 0x23c   :  { %v918_v5 = vmul.f32 1.442695, %v917_v49 }
 0x23e   :  { %1001 = vpow2.f32 %v918_v5 }
 0x24b   :  { %v1002_v57 = vpop.eup %1001 }
 0x24c   :  { %v920_v21 = vadd.f32 1.0, %v1002_v57 }
 0x24e   :  { %1003 = vlog2.f32 %v920_v21 }
 0x25a   :  { %926 = sbr.rel (%p983_p8) target bundleno = 616 (0x268), region = 53 }
 0x25b   :  { %v1004_v40 = vpop.eup %1003 }
 0x25c   :  { %v922_v9 = vmul.f32 0.6931472, %v1004_v40 }
 0x25e   :  { %v923_v14 = vadd.f32 %v922_v9, %v915_v58 }
 0x25f   :  { %v930_v16 = vstv %s927_s8  ;;  %vm933_vm12 = vcmp.lt.s32.totalorder %v1260_v7, 16  ;;  %v935_v20 = vld [vmem:[#allocation16] sm:$0xff] }
 0x260   :  { %v931_v12 = vadd.s32 %v930_v16, %v1257_v3 }
 0x262   :  { %vm932_vm13 = vcmp.lt.s32.totalorder %v931_v12, %v1260_v7 }
 0x263   :  { %vm934_vm14 = vmand %vm932_vm13, %vm933_vm12 }
 0x264   :  { %v936_v22 = vsel %vm934_vm14, %v923_v14, 0.0 }
 0x265   :  { %v937_v33 = vadd.f32 %v936_v22, %v935_v20 }
 0x267   :  { %938 = vst [vmem:[#allocation16] sm:$0xff] %v937_v33 }
 0x268 PF:  { %941 = sbr.rel (%p984_p9) target bundleno = 626 (0x272), region = 57 }
 0x26e   :  { %v942_v10 = vld [vmem:[#allocation16] sm:$0xff] }
 0x26f   :  { %v943_v36 = vadd.f32 %v942_v10, %v923_v14 }
 0x271   :  { %944 = vst [vmem:[#allocation16] sm:$0xff] %v943_v36 }
 0x272 PF:  { %s947_s13 = sld [smem:[#allocation3]]  ;;  %s1128_s14 = smov [#allocation16]  }
 0x273   :  { %s954_s16 = sshll.u32 %s1128_s14, 4  ;;  %s955_s16 = int_to_ptr.vmem [resolvable:$true] %s954_s16 }
 0x274   :  { %s1091_s21 = scalar_lea.vmem %s955_s16, 128  ;;  %p1096_p11 = scmp.lt.s32.totalorder %s955_s16, %s955_s16 }
 0x275   :  { %p1092_p10 = scmp.ne.s32.totalorder %s955_s16, %s1091_s21  ;;  %p1097_p12 = scmp.lt.s32.totalorder %s1091_s21, %s1091_s21 }
 0x277   :  { %p1098_p13 = por %p1097_p12, %p1096_p11 }
 0x278   :  { %s987_s17 = sshll.u32 %s947_s13, 7 }
 0x279   :  { %s952_s0 = scalar_lea.hbm %s1549_s9, %s987_s17  ;;  %p1099_p0 = pnand %p1098_p13, %p1092_p10 }
 0x27b   :  { %1102 = shalt.err (!%p1099_p0)
}
 0x27c   :  { %s1103_s3 = scalar_lea.hbm %s952_s0, 128  ;;  %s1105_s20 = scalar_lea.hbm %s1549_s9, 128 }
 0x27d   :  { %p1104_p1 = scmp.ne.s32.totalorder %s952_s0, %s1103_s3  ;;  %p1106_p2 = scmp.lt.s32.totalorder %s952_s0, %s1549_s9 }
 0x27e   :  { %p1107_p3 = scmp.lt.s32.totalorder %s1105_s20, %s1103_s3 }
 0x280   :  { %p1108_p4 = por %p1107_p3, %p1106_p2 }
 0x282   :  { %p1109_p5 = pnand %p1108_p4, %p1104_p1 }
 0x284   :  { %1112 = shalt.err (!%p1109_p5)
}
 0x285   :  { %957 = dma.vmem_to_hbm [thread:$0]  %s955_s16, 128, %s952_s0, [#allocation10]  }
 0x286   :  { %1119 = dma.done.wait [#allocation10], 128  }
 0x287   :  { %1120 = vsyncadd [#allocation10], 4294967168 }
 0x288   :  { %961 = vsyncpa [#allocation9], 1 }
 0x289   :  { %962 = vsyncpa [#allocation12], 1 }
 0x28a   :  { %963 = vsyncpa [#allocation15], 1 }
 0x28b   :  { %964 = vsyncpa [#allocation10], 1 }

</bundles_post_ra>
